<compile_context>
chip_gen: v6e
topology: v6e:2x2x1
jax: 0.10.0
libtpu: 0.0.40
codegen_flags: <defaults>
</compile_context>

<pallas_src>
import functools

import jax
import jax.numpy as jnp
from jax.experimental import pallas as pl
from jax.experimental.pallas import tpu as pltpu

_LANE = 128
_TP_MAX = 8192                 # lanes per pixel tile (multiple of 256 for MXU)
_NB_MAX = 8                    # batch sub-block (static in-kernel unroll)
_TARGET_BLOCK_BYTES = 1 << 20  # ~1 MiB of input per grid step


def _round_up(x: int, m: int) -> int:
    return ((x + m - 1) // m) * m


def _cdiv(a: int, b: int) -> int:
    return (a + b - 1) // b


def _largest_divisor_leq(n: int, cap: int) -> int:
    cap = max(1, min(n, cap))
    for d in range(cap, 0, -1):
        if n % d == 0:
            return d
    return 1


def _choose_tiles(N, C, P, itemsize):
    """Pick (batch sub-block nb, pixel tile tp) targeting ~1 MiB of x per step."""
    p_full = _round_up(P, _LANE)
    tp_cap = max(_LANE,
                 ((_TARGET_BLOCK_BYTES // max(1, C * itemsize)) // _LANE) * _LANE)
    tp = min(p_full, tp_cap, _TP_MAX)
    nb_des = max(1, _TARGET_BLOCK_BYTES // max(1, C * tp * itemsize))
    nb = _largest_divisor_leq(N, min(_NB_MAX, nb_des))
    # Keep >= 2 grid steps when the shape allows it (v7x megacore: 2 TCs).
    if (N // nb) * _cdiv(P, tp) < 2:
        if N >= 2:
            nb = _largest_divisor_leq(N, N // 2)
        elif P > _LANE:
            tp = max(_LANE, _round_up(_cdiv(P, 2), _LANE))
    return nb, tp


def hourglass_kernel(x_ref, we_ref, be_ref, wd_ref, bd_ref, o_ref):
    # x_ref / o_ref: (nb, C, tp)  lane-dense pixel tile for nb batch elements
    # we_ref: (HID, C)   encoder 1x1-conv weight (PyTorch (out_ch, in_ch) order)
    # be_ref: (HID, 1)   encoder bias (f32)
    # wd_ref: (C, HID)   decoder 1x1-conv weight
    # bd_ref: (C, 1)     decoder bias (f32)
    we = we_ref[...]
    be = be_ref[...]
    wd = wd_ref[...]
    bd = bd_ref[...]
    nb = x_ref.shape[0]
    for b in range(nb):          # static unroll; nb <= _NB_MAX
        x = x_ref[b]             # (C, tp)
        # Encoder: (HID, C) @ (C, tp) -> (HID, tp), f32 accumulation on the MXU.
        h = jax.lax.dot_general(
            we, x,
            dimension_numbers=(((1,), (0,)), ((), ())),
            preferred_element_type=jnp.float32)
        h = jnp.maximum(h + be, 0.0)          # bias + ReLU stay in f32
        # Decoder: (C, HID) @ (HID, tp) -> (C, tp).
        y = jax.lax.dot_general(
            wd, h.astype(wd.dtype),
            dimension_numbers=(((1,), (0,)), ((), ())),
            preferred_element_type=jnp.float32)
        o_ref[b] = (y + bd).astype(o_ref.dtype)


@functools.partial(jax.jit, static_argnames=("tile_p", "block_batch"))
def hourglass_forward(x_nchw, w_enc, b_enc, w_dec, b_dec, *,
                      tile_p=None, block_batch=None):
    """x_nchw: (N, C, H, W).  Returns (N, C, H, W) in x's dtype.

    w_enc: (HID, C), b_enc: (HID, 1), w_dec: (C, HID), b_dec: (C, 1)
    (1x1-conv weights in natural PyTorch (out_ch, in_ch) order).
    tile_p / block_batch override the automatic tile choice (used by the tests).
    """
    N, C, H, W = x_nchw.shape
    hid = w_enc.shape[0]
    P = H * W
    dtype = x_nchw.dtype
    itemsize = dtype.itemsize

    nb, tp = _choose_tiles(N, C, P, itemsize)
    if tile_p is not None:
        tp = _round_up(int(tile_p), _LANE)
    if block_batch is not None:
        nb = int(block_batch)
        if N % nb != 0:
            raise ValueError("block_batch must divide the batch size")
    tp = min(tp, _round_up(P, _LANE))
    if _cdiv(P, tp) == 1:
        tp = P     # single pixel block -> full-extent block (exact stores)

    # Zero-copy view: NCHW already has the spatial (lane) axis last.
    x = x_nchw.reshape(N, C, P)

    we = w_enc.astype(dtype)                          # MXU inputs follow activations
    wd = w_dec.astype(dtype)
    be = b_enc.astype(jnp.float32).reshape(hid, 1)    # epilogue stays f32
    bd = b_dec.astype(jnp.float32).reshape(C, 1)

    grid = (_cdiv(N, nb), _cdiv(P, tp))

    # Advisory cost so XLA can schedule surrounding ops around the custom call.
    flops = 4 * N * P * C * hid                       # two matmuls, 2 flops/MAC
    bytes_accessed = (2 * N * C * P + 2 * C * hid) * itemsize + 4 * (hid + C)
    cost = pl.CostEstimate(flops=flops, transcendentals=0,
                           bytes_accessed=bytes_accessed)

    out = pl.pallas_call(
        hourglass_kernel,
        out_shape=jax.ShapeDtypeStruct((N, C, P), dtype),
        grid_spec=pltpu.PrefetchScalarGridSpec(
            num_scalar_prefetch=0,
            grid=grid,
            in_specs=[
                pl.BlockSpec((nb, C, tp), lambda i, j: (i, 0, j)),
                pl.BlockSpec((hid, C), lambda i, j: (0, 0)),   # resident enc weight
                pl.BlockSpec((hid, 1), lambda i, j: (0, 0)),   # resident enc bias
                pl.BlockSpec((C, hid), lambda i, j: (0, 0)),   # resident dec weight
                pl.BlockSpec((C, 1), lambda i, j: (0, 0)),     # resident dec bias
            ],
            out_specs=pl.BlockSpec((nb, C, tp), lambda i, j: (i, 0, j)),
        ),
        compiler_params=pltpu.CompilerParams(
            # Both axes are independent -> megacore (v7x 2 TCs) can split the grid.
            dimension_semantics=("parallel", "parallel"),
        ),
        cost_estimate=cost,
    )(x, we, be, wd, bd)

    return out.reshape(N, C, H, W)


def _reference(x_nchw, w_enc, b_enc, w_dec, b_dec):
    N, C, H, W = x_nchw.shape
    xf = x_nchw.reshape(N, C, H * W).astype(jnp.float32)
    h = jnp.maximum(jnp.einsum("hc,ncp->nhp", w_enc, xf) + b_enc[None], 0.0)
    y = jnp.einsum("ch,nhp->ncp", w_dec, h) + b_dec[None]
    return y.reshape(N, C, H, W)


if __name__ == "__main__":
    key = jax.random.PRNGKey(0)
    k_x, k_we, k_be, k_wd, k_bd, k_x2 = jax.random.split(key, 6)

    N, C, H, W = 2, 4, 16, 16     # input: (2, 4, 16, 16) NCHW
    HID = 8                       # bottleneck channels (hourglass waist)

    x = jax.random.normal(k_x, (N, C, H, W), dtype=jnp.float32)

    # Deterministic synthetic 1x1-conv parameters, (out_ch, in_ch) order.
    w_enc = jax.random.normal(k_we, (HID, C), dtype=jnp.float32) * 0.1
    b_enc = jax.random.normal(k_be, (HID, 1), dtype=jnp.float32) * 0.1
    w_dec = jax.random.normal(k_wd, (C, HID), dtype=jnp.float32) * 0.1
    b_dec = jax.random.normal(k_bd, (C, 1), dtype=jnp.float32) * 0.1

    # 1) f32 path at the spec shapes: matches the PyTorch module numerics.
    ref = _reference(x, w_enc, b_enc, w_dec, b_dec)
    out = hourglass_forward(x, w_enc, b_enc, w_dec, b_dec)
    jax.block_until_ready(out)
    assert out.shape == (N, C, H, W)
    assert jnp.allclose(out, ref, atol=1e-5, rtol=1e-5)

    # 2) Ragged pixel tiles (P=208, tile_p=128 -> last block clipped) with a
    #    batch sub-block of 2 per grid step: proves boundary-block masking is
    #    safe (no pad / slice round trip needed).
    H2, W2 = 16, 13
    x2 = jax.random.normal(k_x2, (N, C, H2, W2), dtype=jnp.float32)
    ref2 = _reference(x2, w_enc, b_enc, w_dec, b_dec)
    out2 = hourglass_forward(x2, w_enc, b_enc, w_dec, b_dec,
                             tile_p=128, block_batch=2)
    jax.block_until_ready(out2)
    assert out2.shape == (N, C, H2, W2)
    assert jnp.allclose(out2, ref2, atol=1e-5, rtol=1e-5)

    # 3) bf16 HBM-round-trip path (halves bytes/pixel on all generations);
    #    accumulation + bias/ReLU epilogue stay f32 in-kernel.
    out_bf16 = hourglass_forward(x.astype(jnp.bfloat16), w_enc, b_enc, w_dec, b_dec)
    jax.block_until_ready(out_bf16)
    assert jnp.allclose(out_bf16.astype(jnp.float32), ref, atol=5e-2, rtol=5e-2)

    print("KERNEL_OK")
</pallas_src>

<mosaic_0001>
module attributes {stable_mosaic.version = 11 : i64} {
  func.func @hourglass_kernel(%arg0: i32, %arg1: i32, %arg2: memref<1x4x256xf32, #tpu.memory_space<vmem>>, %arg3: memref<8x4xf32, #tpu.memory_space<vmem>>, %arg4: memref<8x1xf32, #tpu.memory_space<vmem>>, %arg5: memref<4x8xf32, #tpu.memory_space<vmem>>, %arg6: memref<4x1xf32, #tpu.memory_space<vmem>>, %arg7: memref<1x4x256xf32, #tpu.memory_space<vmem>>) attributes {dimension_semantics = [#tpu.dimension_semantics<parallel>, #tpu.dimension_semantics<parallel>], iteration_bounds = array<i64: 2, 1>, scalar_prefetch = 0 : i64, scratch_operands = 0 : i64, tpu.core_type = #tpu.core_type<tc>, window_params = [{transform_indices = @transform_0, window_bounds = array<i64: 1, 4, 256>}, {pipeline_mode = #tpu.pipeline_mode<synchronous>, transform_indices = @transform_1, window_bounds = array<i64: 8, 4>}, {pipeline_mode = #tpu.pipeline_mode<synchronous>, transform_indices = @transform_2, window_bounds = array<i64: 8, 1>}, {pipeline_mode = #tpu.pipeline_mode<synchronous>, transform_indices = @transform_3, window_bounds = array<i64: 4, 8>}, {pipeline_mode = #tpu.pipeline_mode<synchronous>, transform_indices = @transform_4, window_bounds = array<i64: 4, 1>}, {transform_indices = @transform_5, window_bounds = array<i64: 1, 4, 256>}]} {
    %c0 = arith.constant 0 : index
    %c0_0 = arith.constant 0 : index
    %0 = vector.load %arg3[%c0, %c0_0] : memref<8x4xf32, #tpu.memory_space<vmem>>, vector<8x4xf32>
    %c0_1 = arith.constant 0 : index
    %c0_2 = arith.constant 0 : index
    %1 = vector.load %arg4[%c0_1, %c0_2] : memref<8x1xf32, #tpu.memory_space<vmem>>, vector<8x1xf32>
    %c0_3 = arith.constant 0 : index
    %c0_4 = arith.constant 0 : index
    %2 = vector.load %arg5[%c0_3, %c0_4] : memref<4x8xf32, #tpu.memory_space<vmem>>, vector<4x8xf32>
    %c0_5 = arith.constant 0 : index
    %c0_6 = arith.constant 0 : index
    %3 = vector.load %arg6[%c0_5, %c0_6] : memref<4x1xf32, #tpu.memory_space<vmem>>, vector<4x1xf32>
    %c0_7 = arith.constant 0 : index
    %c0_8 = arith.constant 0 : index
    %c0_9 = arith.constant 0 : index
    %4 = vector.load %arg2[%c0_7, %c0_8, %c0_9] : memref<1x4x256xf32, #tpu.memory_space<vmem>>, vector<1x4x256xf32>
    %5 = vector.shape_cast %4 : vector<1x4x256xf32> to vector<4x256xf32>
    %cst = arith.constant dense<0.000000e+00> : vector<8x256xf32>
    %6 = tpu.matmul %0, %5, %cst {dimension_numbers = #tpu.dot_dimension_numbers<[1], [0], [0], [1], [0, 0, 1, 1], [], []>} : vector<8x4xf32>, vector<4x256xf32>, vector<8x256xf32> -> vector<8x256xf32>
    %7 = vector.broadcast %1 : vector<8x1xf32> to vector<8x256xf32>
    %8 = arith.addf %6, %7 : vector<8x256xf32>
    %cst_10 = arith.constant 0.000000e+00 : f32
    %9 = vector.broadcast %cst_10 : f32 to vector<8x256xf32>
    %10 = arith.maximumf %8, %9 : vector<8x256xf32>
    %cst_11 = arith.constant dense<0.000000e+00> : vector<4x256xf32>
    %11 = tpu.matmul %2, %10, %cst_11 {dimension_numbers = #tpu.dot_dimension_numbers<[1], [0], [0], [1], [0, 0, 1, 1], [], []>} : vector<4x8xf32>, vector<8x256xf32>, vector<4x256xf32> -> vector<4x256xf32>
    %12 = vector.broadcast %3 : vector<4x1xf32> to vector<4x256xf32>
    %13 = arith.addf %11, %12 : vector<4x256xf32>
    %c0_12 = arith.constant 0 : index
    %c0_13 = arith.constant 0 : index
    %c0_14 = arith.constant 0 : index
    %14 = vector.load %arg7[%c0_12, %c0_13, %c0_14] : memref<1x4x256xf32, #tpu.memory_space<vmem>>, vector<1x4x256xf32>
    %15 = vector.shape_cast %14 : vector<1x4x256xf32> to vector<4x256xf32>
    %16 = vector.shape_cast %13 : vector<4x256xf32> to vector<1x4x256xf32>
    tpu.vector_store %arg7[%c0_12, %c0_13, %c0_14], %16 {strides = array<i32>} : memref<1x4x256xf32, #tpu.memory_space<vmem>>, vector<1x4x256xf32>,
    return
  }
  func.func @transform_0(%arg0: i32, %arg1: i32) -> (i32, i32, i32) {
    %c0_i32 = arith.constant 0 : i32
    %c0_i32_0 = arith.constant 0 : i32
    return %arg0, %c0_i32, %arg1 : i32, i32, i32
  }
  func.func @transform_1(%arg0: i32, %arg1: i32) -> (i32, i32) {
    %c0_i32 = arith.constant 0 : i32
    %c0_i32_0 = arith.constant 0 : i32
    %c0_i32_1 = arith.constant 0 : i32
    return %c0_i32, %c0_i32_0 : i32, i32
  }
  func.func @transform_2(%arg0: i32, %arg1: i32) -> (i32, i32) {
    %c0_i32 = arith.constant 0 : i32
    %c0_i32_0 = arith.constant 0 : i32
    %c0_i32_1 = arith.constant 0 : i32
    return %c0_i32, %c0_i32_0 : i32, i32
  }
  func.func @transform_3(%arg0: i32, %arg1: i32) -> (i32, i32) {
    %c0_i32 = arith.constant 0 : i32
    %c0_i32_0 = arith.constant 0 : i32
    %c0_i32_1 = arith.constant 0 : i32
    return %c0_i32, %c0_i32_0 : i32, i32
  }
  func.func @transform_4(%arg0: i32, %arg1: i32) -> (i32, i32) {
    %c0_i32 = arith.constant 0 : i32
    %c0_i32_0 = arith.constant 0 : i32
    %c0_i32_1 = arith.constant 0 : i32
    return %c0_i32, %c0_i32_0 : i32, i32
  }
  func.func @transform_5(%arg0: i32, %arg1: i32) -> (i32, i32, i32) {
    %c0_i32 = arith.constant 0 : i32
    %c0_i32_0 = arith.constant 0 : i32
    return %arg0, %c0_i32, %arg1 : i32, i32, i32
  }
}

</mosaic_0001>

<bundles_post_ra>
// kernel: hourglass_forward.1
= control target key start
LH: loop header
LB: loop body
LE: loop exit
PB: predicated region body
PF: predicated region fallthrough
CT: control target
= control target key end

     0   :  { %s631_s18 = smov 0   ;;  %s633_s19 = smov 0   ;;  %s679_s0 = inlined_call_operand.vmem [shape: f32[2,4,256], index: 0, kind: input, shape index: {}]   ;;  %s680_s1 = inlined_call_operand.vmem [shape: f32[8,4], index: 1, kind: input, shape index: {}]   ;;  %s681_s2 = inlined_call_operand.vmem [shape: f32[8,1], index: 2, kind: input, shape index: {}]   ;;  %s682_s3 = inlined_call_operand.vmem [shape: f32[4,8], index: 3, kind: input, shape index: {}]   ;;  %s683_s4 = inlined_call_operand.vmem [shape: f32[4,1], index: 4, kind: input, shape index: {}]   ;;  %s684_s5 = inlined_call_operand.vmem [shape: f32[2,4,256], index: 5, kind: output, shape index: {}]  }
   0x1   :  { %s635_s20 = smov 0  }
   0x2 LB: > { %s27_s21 = sadd.s32 1, %s593_s19  ;;  %p534_p0 = scmp.ge.s32.totalorder %s597_s20, 1  ;;  %s597_s20 = sphi %s635_s20, %s15_s20   ;;  %s593_s19 = sphi %s633_s19, %s686_s19   ;;  %s589_s18 = sphi %s631_s18, %s685_s18  }
   0x3   : > { %p29_p1 = scmp.ge.s32.totalorder %s27_s21, 2  ;;  %p208_p2 = scmp.lt.s32.totalorder %s597_s20, 3 }
   0x5   : > { %s688_s21 = smov (%p29_p1, %s27_s21), 0  ;;  %p209_p3 = pnand %p534_p0, %p208_p2 }
   0x6   : > { %p245_p4 = scmp.lt.s32.totalorder (!%p209_p3), %s589_s18, 1 }
   0x7   : > { %212 = sbr.rel (%p209_p3) target bundleno = 421 (0x1a5), region = 40 }
   0xc   : > { %v599_v0 = vmov 0.0   ;;  %v600_v1 = vmov 0   ;;  %v265_v2 = vld [vmem:[%s681_s2] sm:$0xff]  ;;  %s690_s18 = smov (!%p245_p4, %s589_s18), 1  ;;  %vm280_vm0 = vcmask 1043456   ;;  %vm276_vm1 = vcmask 31744  }
   0xd   : > { %349 = vmatprep.mubr.f32.mxu0 %v599_v0  ;;  %573 = vset.pattern.permute.xlu0 %v600_v1  ;;  %v267_v3 = vld [vmem:[%s683_s4] sm:$0xf]  ;;  %s545_s26 = sshll.u32 %s690_s18, 3  ;;  %vm363_vm2 = vcmask 64512  }
   0xe   : > { %271 = vperm.xlu0 %573, %v265_v2   ;;  %431 = vmatprep.mubr.f32.mxu1 %v599_v0  ;;  %s252_s29 = scalar_lea.vmem %s679_s0, %s545_s26  ;;  %v264_v6 = vld [vmem:[%s680_s1] sm:$0xff]  ;;  %s262_s11 = scalar_lea.vmem %s684_s5, %s545_s26 }
   0xf   : > { %v268_v4 = vld [vmem:[%s252_s29] sm:$0xff] }
  0x10   : > { %v275_v5 = vcombine.high %v268_v4, %v268_v4  ;;  %v266_v14 = vld [vmem:[%s682_s3] sm:$0xf] }
  0x12   : > { %360 = vperm.xlu0 %573, %v267_v3   ;;  %539 = vmatprep.subr.msk.mxu0 %vm280_vm0, %v275_v5 }
  0x13   : > { %540 = vmatpush1.msk.msra.mxu0 %vm280_vm0, %v268_v4 }
  0x14   : > { %541 = vmatmul.mubr.msk.f32.vlgmr.msra.gmra.mxu0 %vm276_vm1, %v264_v6 }
  0x89   : > { %v272_v8 = vpop.permute.xlu0 %271 }
  0x8d   : > { %v361_v16 = vpop.permute.xlu0 %360 }
  0xd4   : > { %v351_v7 = vpop.f32.mrf.mxu0 }
  0xd5   : > { %v352_v9 = vadd.f32 %v351_v7, %v272_v8 }
  0xd6   : > { %v353_v10 = vpop.f32.mrf.mxu0 }
  0xd7   : > { %v354_v11 = vadd.f32 %v353_v10, %v272_v8  ;;  %v356_v13 = vmax.f32 %v352_v9, 0.0 }
  0xd9   : > { %v357_v12 = vmax.f32 %v354_v11, 0.0 }
  0xdb   : > { %397 = vmatprep.subr.mxu1 %v357_v12 }
  0xdc   : > { %398 = vmatpush1.msra.mxu1 %v356_v13 }
  0xdd   : > { %542 = vmatmul.mubr.msk.f32.vlgmr.msra.gmra.mxu1 %vm363_vm2, %v266_v14 }
 0x19d   : > { %v433_v15 = vpop.f32.mrf.mxu1 }
 0x19e   : > { %v434_v18 = vadd.f32 %v433_v15, %v361_v16 }
 0x19f   : > { %v435_v17 = vpop.f32.mrf.mxu1 }
 0x1a0   : > { %v436_v19 = vadd.f32 %v435_v17, %v361_v16 }
 0x1a2   : > { %v440_v20 = vcombine.low %v434_v18, %v436_v19 }
 0x1a4   : > { %442 = vst [vmem:[%s262_s11] sm:$0xff] %v440_v20 }
 0x1a5 PF: > { %s15_s20 = sadd.s32 1, %s597_s20   ;;  %s685_s18 = smov %s593_s19 }
 0x1a6   : > { %p12_p5 = scmp.ge.s32.totalorder %s15_s20, 4   ;;  %s686_s19 = smov %s688_s21 }
 0x1a8   :  { %14 = sbr.rel (!%p12_p5) target bundleno = 2 (0x2), region = 70 }

</bundles_post_ra>
